<compile_context>
chip_gen: v7x
topology: tpu7x:2x2x1
jax: 0.10.0
libtpu: 0.0.40
codegen_flags: <defaults>
</compile_context>

<pallas_src>
import functools

import jax
import jax.numpy as jnp
from jax.experimental import pallas as pl
from jax.experimental.pallas import tpu as pltpu


LANES = 128
ROW_ALIGN = 16                       # covers f32 (8,128) and bf16 (16,128) tiles
MAX_BLOCK_BYTES = 4 * 1024 * 1024    # 4 MiB/block -> 24 MiB double-buffered set
VMEM_LIMIT_BYTES = 32 * 1024 * 1024  # explicit scoped-VMEM limit (legal on all gens)


def _round_up(x, m):
    return ((x + m - 1) // m) * m


# ----------------------------------------------------------------------------
# Pallas kernel: elementwise soft update (torch lerp_ semantics), tau baked in.
# Math is done in f32 in-register and stored back in the slab's native dtype.
# ----------------------------------------------------------------------------
def _lerp_kernel(src_ref, tgt_ref, out_ref, *, tau):
    s = src_ref[...].astype(jnp.float32)
    t = tgt_ref[...].astype(jnp.float32)
    out_ref[...] = (t + tau * (s - t)).astype(out_ref.dtype)


@functools.partial(jax.jit, static_argnames=("tau", "block_rows"),
                   donate_argnums=(1,))
def pallas_lerp_slab(src_slab, tgt_slab, *, tau, block_rows):
    """target <- target + tau * (source - target) over a (rows, 128) slab."""
    rows, lanes = tgt_slab.shape
    grid = (rows // block_rows,)
    return pl.pallas_call(
        functools.partial(_lerp_kernel, tau=tau),
        out_shape=jax.ShapeDtypeStruct((rows, lanes), tgt_slab.dtype),
        grid_spec=pl.GridSpec(
            grid=grid,
            in_specs=[
                pl.BlockSpec((block_rows, lanes), lambda i: (i, 0)),  # src
                pl.BlockSpec((block_rows, lanes), lambda i: (i, 0)),  # tgt
            ],
            out_specs=pl.BlockSpec((block_rows, lanes), lambda i: (i, 0)),
        ),
        input_output_aliases={1: 0},  # reuse the target slab buffer
        compiler_params=pltpu.CompilerParams(
            dimension_semantics=("parallel",),
            vmem_limit_bytes=VMEM_LIMIT_BYTES),
    )(src_slab, tgt_slab)


# ----------------------------------------------------------------------------
# Slab geometry / flatten / scatter / meta helpers.
# ----------------------------------------------------------------------------
def _slab_geometry(n_elems, itemsize):
    rows = pl.cdiv(max(n_elems, 1), LANES)
    rows = _round_up(rows, ROW_ALIGN)
    max_block_rows = max(
        ROW_ALIGN,
        (MAX_BLOCK_BYTES // (LANES * itemsize)) // ROW_ALIGN * ROW_ALIGN)
    # At least 2 grid steps when the slab is big enough (v7x: 2 TensorCores);
    # cdiv-based split bounds tail padding to ~grid*ROW_ALIGN rows instead of
    # up to a whole block.
    grid_n = max(pl.cdiv(rows, max_block_rows),
                 2 if rows >= 2 * ROW_ALIGN else 1)
    block_rows = _round_up(pl.cdiv(rows, grid_n), ROW_ALIGN)
    rows = grid_n * block_rows
    return rows, block_rows


def _tree_meta(tree):
    leaves, treedef = jax.tree_util.tree_flatten(tree)
    assert leaves, "TargetUpdater: parameter tree is empty"
    shapes = [tuple(x.shape) for x in leaves]
    sizes = [int(x.size) for x in leaves]
    dtypes = [jnp.dtype(x.dtype) for x in leaves]
    groups = {}     # dtype -> one lane-dense slab per floating dtype
    copy_idx = []   # non-floating leaves: hard-copied, never lerped
    leaf_loc = [None] * len(leaves)   # (dtype, offset) or None
    for i, dt in enumerate(dtypes):
        if jnp.issubdtype(dt, jnp.floating):
            g = groups.setdefault(dt, dict(indices=[], offsets=[], n=0))
            leaf_loc[i] = (dt, g["n"])
            g["indices"].append(i)
            g["offsets"].append(g["n"])
            g["n"] += sizes[i]
        else:
            copy_idx.append(i)
    for dt, g in groups.items():
        g["rows"], g["block_rows"] = _slab_geometry(g["n"], jnp.dtype(dt).itemsize)
    return dict(treedef=treedef, shapes=shapes, sizes=sizes, dtypes=dtypes,
                groups=groups, copy_idx=copy_idx, leaf_loc=leaf_loc,
                n_leaves=len(leaves))


def _flatten_group(leaves, g, dtype):
    """Build a (rows, 128) slab from a dtype group.  Used only at __init__."""
    flat = jnp.concatenate([leaves[i].reshape(-1) for i in g["indices"]])
    pad = g["rows"] * LANES - g["n"]
    if pad:
        flat = jnp.concatenate([flat, jnp.zeros((pad,), dtype)])
    return flat.reshape(g["rows"], LANES)


def _scatter_impl(slab, leaves):
    flat = slab.reshape(-1)
    off = 0
    for x in leaves:
        sz = int(x.size)
        flat = flat.at[off:off + sz].set(x.reshape(-1))
        off += sz
    return flat.reshape(slab.shape)


@functools.partial(jax.jit, donate_argnums=(0,))
def _scatter_into_slab_donated(slab, leaves):
    return _scatter_impl(slab, leaves)


@jax.jit
def _scatter_into_slab(slab, leaves):
    return _scatter_impl(slab, leaves)


# ----------------------------------------------------------------------------
# TargetUpdater
# ----------------------------------------------------------------------------
class TargetUpdater:
    """JAX/Pallas port of alf TargetUpdater (non-delayed update path).

    Parameters live in per-dtype, lane-dense (rows, 128) slabs; the only
    device work per update step is one Pallas lerp kernel per dtype slab.
    Hard copies (tau == 1.0, buffers, init_copy, integer leaves) are rebinds
    of immutable JAX arrays and cost nothing.
    """

    def __init__(self, params, target_params, buffers=None, target_buffers=None,
                 tau=1.0, period=1, init_copy=True):
        self._tau = float(tau)
        self._period = int(period)
        self._counter = 0

        self._meta = _tree_meta(params)
        self._check_tree(params)
        self._check_tree(target_params)

        src_leaves = jax.tree_util.tree_leaves(params)
        tgt_leaves = jax.tree_util.tree_leaves(target_params)
        self._p_slabs = {dt: _flatten_group(src_leaves, g, dt)
                         for dt, g in self._meta["groups"].items()}
        self._tp_slabs = {dt: _flatten_group(tgt_leaves, g, dt)
                          for dt, g in self._meta["groups"].items()}
        self._p_copy = {i: src_leaves[i] for i in self._meta["copy_idx"]}
        self._tp_copy = {i: tgt_leaves[i] for i in self._meta["copy_idx"]}

        self._buffers = buffers if buffers is not None else {}
        self._target_buffers = (target_buffers if target_buffers is not None
                                else self._buffers)

        self._version = 0
        self._tp_cache = None
        self._tp_cache_version = -1

        if init_copy:
            # Hard copy == rebind of immutable arrays (zero HBM traffic).
            self._tp_slabs = dict(self._p_slabs)
            self._tp_copy = dict(self._p_copy)
            self._target_buffers = self._buffers
            self._version += 1

    # -- validation -----------------------------------------------------------
    def _check_tree(self, tree):
        leaves, treedef = jax.tree_util.tree_flatten(tree)
        assert treedef == self._meta["treedef"], \
            "TargetUpdater: tree structure differs from __init__"
        assert [tuple(x.shape) for x in leaves] == self._meta["shapes"], \
            "TargetUpdater: leaf shapes differ from __init__"
        assert [jnp.dtype(x.dtype) for x in leaves] == self._meta["dtypes"], \
            "TargetUpdater: leaf dtypes differ from __init__"

    # -- source-side state ----------------------------------------------------
    def set_source(self, params, buffers=None):
        """Update the source model state (e.g. after a training step).

        The re-flatten is fused into one jitted, donated scatter per dtype
        slab (the existing source slab buffer is reused in place).  Training
        loops that keep parameters resident in slab form should use
        set_source_slabs() instead, which is a zero-cost rebind.
        """
        self._check_tree(params)
        leaves = jax.tree_util.tree_leaves(params)
        for dt, g in self._meta["groups"].items():
            group_leaves = tuple(leaves[i] for i in g["indices"])
            old = self._p_slabs[dt]
            if self._tp_slabs[dt] is old:
                # Target currently aliases this buffer -> do not donate it.
                self._p_slabs[dt] = _scatter_into_slab(old, group_leaves)
            else:
                self._p_slabs[dt] = _scatter_into_slab_donated(old, group_leaves)
        for i in self._meta["copy_idx"]:
            self._p_copy[i] = leaves[i]
        if buffers is not None:
            assert (jax.tree_util.tree_structure(buffers)
                    == jax.tree_util.tree_structure(self._buffers)), \
                "set_source: buffer tree structure changed"
            self._buffers = buffers

    def set_source_slabs(self, slabs, copy_leaves=None, buffers=None):
        """Zero-cost source update for slab-resident training loops."""
        for dt in self._meta["groups"]:
            assert slabs[dt].shape == self._p_slabs[dt].shape
            assert slabs[dt].dtype == self._p_slabs[dt].dtype
            self._p_slabs[dt] = slabs[dt]
        if copy_leaves is not None:
            self._p_copy.update(copy_leaves)
        if buffers is not None:
            self._buffers = buffers

    def source_slabs(self):
        return dict(self._p_slabs)

    # -- update step ------------------------------------------------------------
    def forward(self):
        self._counter += 1
        if self._counter % self._period == 0:
            if self._tau != 1.0:
                for dt, g in self._meta["groups"].items():
                    p, tp = self._p_slabs[dt], self._tp_slabs[dt]
                    if tp is not p:
                        self._tp_slabs[dt] = pallas_lerp_slab(
                            p, tp, tau=self._tau, block_rows=g["block_rows"])
                    # else: target aliases source -> lerp is a no-op, and
                    # skipping avoids donating a buffer the source still uses.
                # Non-floating parameter leaves: hard copy (rebind).
                self._tp_copy = dict(self._p_copy)
            else:
                self._tp_slabs = dict(self._p_slabs)   # hard update == rebind
                self._tp_copy = dict(self._p_copy)
            self._target_buffers = self._buffers       # buffers always copied
            self._version += 1

    __call__ = forward

    # -- target-side views --------------------------------------------------------
    def target_params(self):
        if self._tp_cache_version != self._version:
            self._tp_cache = self._unflatten_target()
            self._tp_cache_version = self._version
        return self._tp_cache

    def target_buffers(self):
        return self._target_buffers

    def target_slabs(self):
        return dict(self._tp_slabs)

    def _unflatten_target(self):
        meta = self._meta
        flats = {dt: self._tp_slabs[dt].reshape(-1) for dt in meta["groups"]}
        leaves = [None] * meta["n_leaves"]
        for i in range(meta["n_leaves"]):
            loc = meta["leaf_loc"][i]
            if loc is None:
                leaves[i] = self._tp_copy[i]
            else:
                dt, off = loc
                sz = meta["sizes"][i]
                leaves[i] = flats[dt][off:off + sz].reshape(meta["shapes"][i])
        return jax.tree_util.tree_unflatten(meta["treedef"], leaves)


# ----------------------------------------------------------------------------
# Self-test
# ----------------------------------------------------------------------------
if __name__ == "__main__":
    key = jax.random.PRNGKey(0)
    ks = jax.random.split(key, 14)

    hidden, out_dim = 32, 4
    # Source model: small MLP + an embedding-like table (pushes the f32 slab
    # to a multi-block grid with a padded tail) + one bf16 leaf (second dtype
    # slab) + one integer leaf (hard-copy path), plus float and int buffers.
    params = {
        "W1": jax.random.normal(ks[0], (hidden, hidden), jnp.float32),
        "b1": jax.random.normal(ks[1], (hidden,), jnp.float32),
        "W2": jax.random.normal(ks[2], (hidden, out_dim), jnp.float32),
        "b2": jax.random.normal(ks[3], (out_dim,), jnp.float32),
        "emb": jax.random.normal(ks[4], (1100, 128), jnp.float32),
        "Wh": jax.random.normal(ks[5], (256, 128), jnp.float32).astype(jnp.bfloat16),
        "scale_idx": jnp.arange(8, dtype=jnp.int32),
    }
    buffers = {
        "running_mean": jax.random.normal(ks[6], (hidden,), jnp.float32),
        "num_batches_tracked": jnp.array(3, jnp.int32),
    }

    target_params = {
        "W1": jax.random.normal(ks[7], (hidden, hidden), jnp.float32),
        "b1": jax.random.normal(ks[8], (hidden,), jnp.float32),
        "W2": jax.random.normal(ks[9], (hidden, out_dim), jnp.float32),
        "b2": jax.random.normal(ks[10], (out_dim,), jnp.float32),
        "emb": jax.random.normal(ks[11], (1100, 128), jnp.float32),
        "Wh": jax.random.normal(ks[12], (256, 128), jnp.float32).astype(jnp.bfloat16),
        "scale_idx": jnp.arange(8, dtype=jnp.int32) + 100,
    }
    target_buffers = {
        "running_mean": jax.random.normal(ks[13], (hidden,), jnp.float32),
        "num_batches_tracked": jnp.array(0, jnp.int32),
    }

    tau, period = 0.05, 2

    def ref_update(src, tgt):
        def f(s, t):
            if jnp.issubdtype(s.dtype, jnp.floating):
                s32 = s.astype(jnp.float32)
                t32 = t.astype(jnp.float32)
                return (t32 + tau * (s32 - t32)).astype(s.dtype)
            return s  # non-floating params are hard-copied
        return jax.tree_util.tree_map(f, src, tgt)

    def close(a, b, dt):
        a32 = jnp.asarray(a).astype(jnp.float32)
        b32 = jnp.asarray(b).astype(jnp.float32)
        tol = 1e-2 if dt == jnp.dtype(jnp.bfloat16) else 1e-5
        return bool(jnp.allclose(a32, b32, atol=tol, rtol=tol))

    updater = TargetUpdater(params, target_params, buffers, target_buffers,
                            tau=tau, period=period, init_copy=False)

    # counter = 1: period not reached, target must be unchanged.
    updater.forward()
    tp_after_1 = jax.block_until_ready(updater.target_params())

    # counter = 2: first soft update + buffer copy.
    updater.forward()
    tp1 = jax.block_until_ready(updater.target_params())
    tb1 = jax.block_until_ready(updater.target_buffers())
    ref_tp1 = ref_update(params, target_params)

    # New source (training step) -> donated scatter into resident slabs.
    def bump(x):
        if jnp.issubdtype(x.dtype, jnp.floating):
            return x + jnp.asarray(0.5, x.dtype)
        return (x + 7).astype(x.dtype)
    params2 = jax.tree_util.tree_map(bump, params)
    buffers2 = jax.tree_util.tree_map(bump, buffers)
    updater.set_source(params2, buffers2)

    # counter = 3 (no update), counter = 4 (second soft update).
    updater.forward()
    updater.forward()
    tp2 = jax.block_until_ready(updater.target_params())
    tb2 = jax.block_until_ready(updater.target_buffers())
    ref_tp2 = ref_update(params2, ref_tp1)

    ok = True
    for k in params:
        dt = jnp.dtype(params[k].dtype)
        ok &= bool(jnp.array_equal(tp_after_1[k], target_params[k]))
        ok &= close(tp1[k], ref_tp1[k], dt)
        ok &= close(tp2[k], ref_tp2[k], dt)
        ok &= (jnp.dtype(tp2[k].dtype) == dt)
        ok &= (tuple(tp2[k].shape) == tuple(params[k].shape))
    for k in buffers:
        ok &= bool(jnp.array_equal(tb1[k], buffers[k]))
        ok &= bool(jnp.array_equal(tb2[k], buffers2[k]))
        ok &= (tb2[k].dtype == buffers[k].dtype)

    assert ok, "Pallas TargetUpdater mismatch vs reference"
    print("KERNEL_OK")
</pallas_src>

<mosaic_0001>
module attributes {stable_mosaic.version = 11 : i64} {
  func.func @_lerp_kernel(%arg0: i32, %arg1: memref<560x128xf32, #tpu.memory_space<vmem>>, %arg2: memref<560x128xf32, #tpu.memory_space<vmem>>, %arg3: memref<560x128xf32, #tpu.memory_space<vmem>>) attributes {dimension_semantics = [#tpu.dimension_semantics<parallel>], iteration_bounds = array<i64: 2>, scalar_prefetch = 0 : i64, scratch_operands = 0 : i64, tpu.core_type = #tpu.core_type<tc>, window_params = [{transform_indices = @transform_0, window_bounds = array<i64: 560, 128>}, {transform_indices = @transform_1, window_bounds = array<i64: 560, 128>}, {transform_indices = @transform_2, window_bounds = array<i64: 560, 128>}]} {
    %c0 = arith.constant 0 : index
    %c0_0 = arith.constant 0 : index
    %0 = vector.load %arg1[%c0, %c0_0] : memref<560x128xf32, #tpu.memory_space<vmem>>, vector<560x128xf32>
    %c0_1 = arith.constant 0 : index
    %c0_2 = arith.constant 0 : index
    %1 = vector.load %arg2[%c0_1, %c0_2] : memref<560x128xf32, #tpu.memory_space<vmem>>, vector<560x128xf32>
    %2 = arith.subf %0, %1 : vector<560x128xf32>
    %cst = arith.constant 5.000000e-02 : f32
    %3 = vector.broadcast %cst : f32 to vector<560x128xf32>
    %4 = arith.mulf %3, %2 : vector<560x128xf32>
    %5 = arith.addf %1, %4 : vector<560x128xf32>
    %c0_3 = arith.constant 0 : index
    %c0_4 = arith.constant 0 : index
    %6 = vector.load %arg3[%c0_3, %c0_4] : memref<560x128xf32, #tpu.memory_space<vmem>>, vector<560x128xf32>
    tpu.vector_store %arg3[%c0_3, %c0_4], %5 {strides = array<i32>} : memref<560x128xf32, #tpu.memory_space<vmem>>, vector<560x128xf32>,
    return
  }
  func.func @transform_0(%arg0: i32) -> (i32, i32) {
    %c0_i32 = arith.constant 0 : i32
    %c0_i32_0 = arith.constant 0 : i32
    return %arg0, %c0_i32 : i32, i32
  }
  func.func @transform_1(%arg0: i32) -> (i32, i32) {
    %c0_i32 = arith.constant 0 : i32
    %c0_i32_0 = arith.constant 0 : i32
    return %arg0, %c0_i32 : i32, i32
  }
  func.func @transform_2(%arg0: i32) -> (i32, i32) {
    %c0_i32 = arith.constant 0 : i32
    %c0_i32_0 = arith.constant 0 : i32
    return %arg0, %c0_i32 : i32, i32
  }
}

</mosaic_0001>

<bundles_post_ra>
// kernel: pallas_lerp_slab.1
= control target key start
LH: loop header
LB: loop body
LE: loop exit
PB: predicated region body
PF: predicated region fallthrough
CT: control target
= control target key end

     0   :  { %7 = vsyncpa [#allocation3], 0  ;;  %s1398_s0 = inlined_call_operand.hbm [shape: f32[1120,128], index: 0, kind: input, shape index: {}]   ;;  %s1399_s1 = inlined_call_operand.hbm [shape: f32[1120,128], index: 1, kind: input, shape index: {}, may-alias: {1,2}]   ;;  %s1400_s2 = inlined_call_operand.hbm [shape: f32[1120,128], index: 2, kind: output, shape index: {}, may-alias: {1,2}]  }
   0x1   :  { %9 = vsyncpa [#allocation3 + $0x1], 0 }
   0x2   :  { %10 = vsyncpa [#allocation6], 0 }
   0x3   :  { %12 = vsyncpa [#allocation6 + $0x1], 0 }
   0x4   :  { %13 = vsyncpa [#allocation4], 0 }
   0x5   :  { %15 = vsyncpa [#allocation4 + $0x1], 0  ;;  %s959_s9 = smov 0   ;;  %s961_s10 = smov 0  }
   0x6   :  { %s963_s11 = smov 0   ;;  %s965_s12 = smov 0  }
   0x7 LB: > { %s980_s13 = sadd.s32 4294967295, %s935_s12   ;;  %s735_s14 = sadd.s32 4294967294, %s935_s12   ;;  %s935_s12 = sphi %s965_s12, %s1415_s12   ;;  %s931_s11 = sphi %s963_s11, %s1414_s11   ;;  %s927_s10 = sphi %s961_s10, %s1413_s10   ;;  %s923_s9 = sphi %s959_s9, %s1412_s9  }
   0x8   : > { %s984_s15 = sadd.s32 1, %s935_s12   ;;  %s28_s16 = sadd.s32 1, %s931_s11 }
   0x9   : > { %s25_s17 = ssub.s32 %s935_s12, %s984_s15  ;;  %p35_p0 = scmp.ne.s32.totalorder %s931_s11, %s927_s10 }
   0xa   : > { %p26_p1 = scmp.eq.s32.totalorder %s25_s17, 0  ;;  %p36_p2 = scmp.eq.s32.totalorder %s935_s12, 0 }
   0xb   : > { %p41_p3 = scmp.ne.s32.totalorder %s927_s10, %s923_s9  ;;  %p42_p4 = scmp.eq.s32.totalorder %s980_s13, 0 }
   0xc   : > { %s996_s18 = scalar_select %p26_p1, %s931_s11, %s28_s16  }
   0xd   : > { %p37_p5 = por %p36_p2, %p35_p0  ;;  %p998_p6 = por %p42_p4, %p41_p3 }
   0xe   : > { %p91_p7 = scmp.eq.s32.totalorder %s980_s13, 1  ;;  %p97_p8 = scmp.eq.s32.totalorder %s735_s14, 1 }
   0xf   : > { %s1403_s19 = scalar_select %p998_p6, 1, 0 }
  0x10   : > { %p767_p10 = scmp.lt.s32.totalorder %s935_s12, 2  ;;  %p1005_p11 = por %p91_p7, %p35_p0 }
  0x11   : > { %p1009_p12 = por %p97_p8, %p41_p3  ;;  %s1014_s22 = sand.u32 1, %s931_s11  }
  0x12   : > { %s1404_s20 = scalar_select %p1005_p11, 1, 0 }
  0x13   : > { %s1405_s21 = scalar_select %p1009_p12, 1, 0 }
  0x14   : > { %s744_s23 = smul.u32 8960, %s935_s12  ;;  %p1025_p13 = pnand %p767_p10, %p37_p5 }
  0x15   : > { %s747_s24 = smul.u32 560, %s1014_s22  ;;  %s118_s3 = scalar_lea.sflag [#allocation3], %s1014_s22 }
  0x16   : > { %s1023_s27 = scalar_lea.hbm %s1398_s0, %s744_s23  ;;  %p807_p1 = pneg %p1025_p13 }
  0x17   : > { %s121_s29 = scalar_lea.vmem [#allocation2], %s747_s24  ;;  %s805_s4 = scalar_lea.hbm %s1023_s27, 8960 }
  0x18   : > { %s128_s30 = sshll.u32 %s121_s29, 4  ;;  %p806_p0 = scmp.ne.s32.totalorder %s1023_s27, %s805_s4  ;;  %s1031_s30 = int_to_ptr.vmem [resolvable:$true] %s128_s30 }
  0x19   : > { %s810_s7 = scalar_lea.hbm %s1398_s0, 17920  ;;  %p811_p4 = scmp.lt.u32.totalorder %s1023_s27, %s1398_s0 }
  0x1a   : > { %p808_p2 = pnand %p807_p1, %p806_p0  ;;  %p812_p5 = scmp.lt.u32.totalorder %s810_s7, %s805_s4 }
  0x1b   : > { %p814_p8 = scmp.lt.u32.totalorder %s805_s4, %s1023_s27 }
  0x1c   : > { %p809_p3 = pneg %p808_p2  ;;  %p813_p7 = por %p812_p5, %p811_p4 }
  0x1e   : > { %p815_p10 = por %p814_p8, %p813_p7 }
  0x20   : > { %p816_p9 = pnand %p815_p10, %p809_p3 }
  0x22   : > { %819 = shalt.err (!%p816_p9)
}
  0x23   : > { %s820_s16 = scalar_lea.vmem %s1031_s30, 8960  ;;  %s937_s17 = smov [#allocation2]  }
  0x24   : > { %p821_p0 = scmp.ne.s32.totalorder %s1031_s30, %s820_s16  ;;  %s825_s25 = sshll.u32 %s937_s17, 4  ;;  %s826_s25 = int_to_ptr.vmem [resolvable:$false] %s825_s25 }
  0x25   : > { %s827_s26 = scalar_lea.vmem %s826_s25, 17920  ;;  %p828_p11 = scmp.lt.s32.totalorder %s1031_s30, %s826_s25 }
  0x26   : > { %p823_p2 = pnand %p821_p0, %p807_p1  ;;  %p829_p4 = scmp.lt.s32.totalorder %s827_s26, %s820_s16 }
  0x28   : > { %p824_p12 = pneg %p823_p2  ;;  %p830_p5 = por %p829_p4, %p828_p11 }
  0x2a   : > { %p831_p7 = pnand %p830_p5, %p824_p12 }
  0x2c   : > { %834 = shalt.err (!%p831_p7)
}
  0x2d   : > { %s938_s29 = smov 128   ;;  %s939_s4 = smov 8  }
  0x2e   : > { %759 = dma.hbm_to_vmem [thread:$0]  (!%p1025_p13), %s1023_s27, 8960, %s1031_s30, %s118_s3, %s938_s29, %s938_s29, %s939_s4  }
  0x2f   : > { %p740_p9 = scmp.ge.s32.totalorder %s935_s12, 1  ;;  %p157_p11 = scmp.lt.s32.totalorder %s935_s12, 3 }
  0x30   : > { %s1075_s8 = scalar_lea.hbm %s1399_s1, %s744_s23  ;;  %s142_s14 = scalar_lea.vmem [#allocation5], %s747_s24 }
  0x31   : > { %p1066_p12 = pnand %p740_p9, %p157_p11  ;;  %s149_s16 = sshll.u32 %s142_s14, 4  ;;  %s1079_s16 = int_to_ptr.vmem [resolvable:$true] %s149_s16 }
  0x32   : > { %s139_s27 = scalar_lea.sflag [#allocation6], %s1014_s22  ;;  %s835_s30 = scalar_lea.hbm %s1075_s8, 8960 }
  0x33   : > { %p836_p3 = scmp.ne.s32.totalorder %s1075_s8, %s835_s30  ;;  %s840_s23 = scalar_lea.hbm %s1399_s1, 17920 }
  0x34   : > { %p841_p0 = scmp.lt.u32.totalorder %s1075_s8, %s1399_s1  ;;  %p842_p2 = scmp.lt.u32.totalorder %s840_s23, %s835_s30 }
  0x35   : > { %p838_p8 = pnand %p836_p3, %p807_p1  ;;  %p844_p5 = scmp.lt.u32.totalorder %s835_s30, %s1075_s8 }
  0x36   : > { %p843_p4 = por %p842_p2, %p841_p0 }
  0x37   : > { %p839_p10 = pneg %p838_p8 }
  0x38   : > { %p845_p7 = por %p844_p5, %p843_p4 }
  0x3a   : > { %p846_p9 = pnand %p845_p7, %p839_p10 }
  0x3c   : > { %849 = shalt.err (!%p846_p9)
}
  0x3d   : > { %s850_s24 = scalar_lea.vmem %s1079_s16, 8960  ;;  %s940_s6 = smov [#allocation5]  }
  0x3e   : > { %p851_p11 = scmp.ne.s32.totalorder %s1079_s16, %s850_s24  ;;  %s855_s7 = sshll.u32 %s940_s6, 4  ;;  %s856_s7 = int_to_ptr.vmem [resolvable:$false] %s855_s7 }
  0x3f   : > { %s857_s14 = scalar_lea.vmem %s856_s7, 17920  ;;  %p858_p6 = scmp.lt.s32.totalorder %s1079_s16, %s856_s7 }
  0x40   : > { %p853_p3 = pnand %p851_p11, %p807_p1  ;;  %p859_p0 = scmp.lt.s32.totalorder %s857_s14, %s850_s24 }
  0x42   : > { %p854_p8 = pneg %p853_p3  ;;  %p860_p2 = por %p859_p0, %p858_p6 }
  0x44   : > { %p861_p4 = pnand %p860_p2, %p854_p8 }
  0x46   : > { %864 = shalt.err (!%p861_p4)
}
  0x47   : > { %762 = dma.hbm_to_vmem [thread:$0]  (!%p1025_p13), %s1075_s8, 8960, %s1079_s16, %s139_s27, %s938_s29, %s938_s29, %s939_s4  }
  0x48   : > { %161 = sbr.rel (%p1066_p12) target bundleno = 162 (0xa2), region = 28  ;;  %s1113_s30 = sand.u32 (!%p1066_p12), 1, %s927_s10  }
  0x49   : > { %s1116_s3 = smul.u32 (!%p1066_p12), 560, %s1113_s30  ;;  %s164_s28 = scalar_lea.sflag (!%p1066_p12), [#allocation3], %s1113_s30 }
  0x4a   : > { %p1408_p6 = scmp.ne.s32.totalorder (!%p1066_p12), %s1403_s19, 0 }
  0x4b   : > { %s1120_s17 = scalar_lea.vmem (!%p1066_p12), [#allocation2], %s1116_s3 }
  0x4f   : > { %910 = dma.done.wait (%p1408_p6), %s164_s28, 8960  }
  0x50   : > { %912 = vsyncadd (%p1408_p6), %s164_s28, 4294958336  ;;  %s173_s22 = scalar_lea.sflag [#allocation6], %s1113_s30  ;;  %s1128_s29 = scalar_lea.vmem [#allocation5], %s1116_s3 }
  0x51   : > { %914 = dma.done.wait (%p1408_p6), %s173_s22, 8960  }
  0x52   : > { %916 = vsyncadd (%p1408_p6), %s173_s22, 4294958336  ;;  %v205_v0 = vld [vmem:[%s1120_s17] sm:$0xff]  ;;  %v206_v2 = vld [vmem:[%s1120_s17 + $0x8] sm:$0xff]  ;;  %s1154_s19 = scalar_lea.vmem [#allocation7], %s1116_s3  ;;  %s746_s4 = smul.u32 8960, %s980_s13 }
  0x53   : > { %v275_v1 = vld [vmem:[%s1128_s29] sm:$0xff]  ;;  %v276_v4 = vld [vmem:[%s1128_s29 + $0x8] sm:$0xff]  ;;  %v207_v5 = vld [vmem:[%s1120_s17 + $0x10] sm:$0xff]  ;;  %s639_s5 = sshll.u32 %s1154_s19, 4  ;;  %s626_s27 = scalar_lea.sflag [#allocation4], %s1113_s30  ;;  %s1346_s5 = int_to_ptr.vmem [resolvable:$true] %s639_s5 }
  0x54   : > { %v345_v3 = vsub.f32 %v205_v0, %v275_v1  ;;  %v277_v6 = vld [vmem:[%s1128_s29 + $0x10] sm:$0xff]  ;;  %v346_v7 = vsub.f32 %v206_v2, %v276_v4  ;;  %v208_v9 = vld [vmem:[%s1120_s17 + $0x18] sm:$0xff]  ;;  %v209_v11 = vld [vmem:[%s1120_s17 + $0x20] sm:$0xff]  ;;  %s1352_s16 = scalar_lea.hbm %s1400_s2, %s746_s4  ;;  %s865_s23 = scalar_lea.vmem %s1346_s5, 8960 }
  0x55   : > { %v347_v8 = vsub.f32 %v207_v5, %v277_v6  ;;  %v278_v10 = vld [vmem:[%s1128_s29 + $0x18] sm:$0xff]  ;;  %v279_v14 = vld [vmem:[%s1128_s29 + $0x20] sm:$0xff]  ;;  %v210_v15 = vld [vmem:[%s1120_s17 + $0x28] sm:$0xff]  ;;  %p866_p13 = scmp.ne.s32.totalorder %s1346_s5, %s865_s23  ;;  %p1409_p1 = scmp.ne.s32.totalorder %s1404_s20, 0 }
  0x56   : > { %v415_v12 = vmul.f32 0.05, %v345_v3  ;;  %v348_v13 = vsub.f32 %v208_v9, %v278_v10  ;;  %v280_v16 = vld [vmem:[%s1128_s29 + $0x28] sm:$0xff]  ;;  %v416_v17 = vmul.f32 0.05, %v346_v7  ;;  %v349_v19 = vsub.f32 %v209_v11, %v279_v14  ;;  %v211_v21 = vld [vmem:[%s1120_s17 + $0x30] sm:$0xff] }
  0x57   : > { %v417_v18 = vmul.f32 0.05, %v347_v8  ;;  %v350_v20 = vsub.f32 %v210_v15, %v280_v16  ;;  %v281_v22 = vld [vmem:[%s1128_s29 + $0x30] sm:$0xff]  ;;  %v212_v26 = vld [vmem:[%s1120_s17 + $0x38] sm:$0xff]  ;;  %v213_v28 = vld [vmem:[%s1120_s17 + $0x40] sm:$0xff]  ;;  %p867_p12 = pnand %p866_p13, %p1409_p1  ;;  %s941_s25 = smov [#allocation7]  }
  0x58   : > { %v485_v23 = vadd.f32 %v415_v12, %v275_v1  ;;  %v418_v24 = vmul.f32 0.05, %v348_v13  ;;  %v351_v25 = vsub.f32 %v211_v21, %v281_v22  ;;  %v282_v27 = vld [vmem:[%s1128_s29 + $0x38] sm:$0xff]  ;;  %v486_v29 = vadd.f32 %v416_v17, %v276_v4  ;;  %v283_v33 = vld [vmem:[%s1128_s29 + $0x40] sm:$0xff]  ;;  %v214_v34 = vld [vmem:[%s1120_s17 + $0x48] sm:$0xff]  ;;  %s869_s26 = sshll.u32 %s941_s25, 4  ;;  %s870_s26 = int_to_ptr.vmem [resolvable:$false] %s869_s26 }
  0x59   : > { %v487_v30 = vadd.f32 %v417_v18, %v277_v6  ;;  %v419_v31 = vmul.f32 0.05, %v349_v19  ;;  %v420_v32 = vmul.f32 0.05, %v350_v20  ;;  %v352_v37 = vsub.f32 %v212_v26, %v282_v27  ;;  %v284_v39 = vld [vmem:[%s1128_s29 + $0x48] sm:$0xff]  ;;  %v215_v40 = vld [vmem:[%s1120_s17 + $0x50] sm:$0xff]  ;;  %p868_p10 = pneg %p867_p12  ;;  %p872_p5 = scmp.lt.s32.totalorder %s1346_s5, %s870_s26 }
  0x5a   : > { %555 = vst [vmem:[%s1154_s19] sm:$0xff] %v485_v23  ;;  %v488_v35 = vadd.f32 %v418_v24, %v278_v10  ;;  %v421_v36 = vmul.f32 0.05, %v351_v25  ;;  %v353_v38 = vsub.f32 %v213_v28, %v283_v33  ;;  %v285_v41 = vld [vmem:[%s1128_s29 + $0x50] sm:$0xff]  ;;  %556 = vst [vmem:[%s1154_s19 + $0x8] sm:$0xff] %v486_v29  ;;  %v354_v44 = vsub.f32 %v214_v34, %v284_v39  ;;  %v216_v46 = vld [vmem:[%s1120_s17 + $0x58] sm:$0xff]  ;;  %s871_s24 = scalar_lea.vmem %s870_s26, 17920 }
  0x5b   : > { %557 = vst [vmem:[%s1154_s19 + $0x10] sm:$0xff] %v487_v30  ;;  %v489_v42 = vadd.f32 %v419_v31, %v279_v14  ;;  %v490_v43 = vadd.f32 %v420_v32, %v280_v16  ;;  %v355_v45 = vsub.f32 %v215_v40, %v285_v41  ;;  %v286_v47 = vld [vmem:[%s1128_s29 + $0x58] sm:$0xff]  ;;  %v217_v48 = vld [vmem:[%s1120_s17 + $0x60] sm:$0xff]  ;;  %v422_v50 = vmul.f32 0.05, %v352_v37  ;;  %v218_v54 = vld [vmem:[%s1120_s17 + $0x68] sm:$0xff]  ;;  %p873_p7 = scmp.lt.s32.totalorder %s871_s24, %s865_s23 }
  0x5c   : > { %558 = vst [vmem:[%s1154_s19 + $0x18] sm:$0xff] %v488_v35  ;;  %v491_v49 = vadd.f32 %v421_v36, %v281_v22  ;;  %v423_v51 = vmul.f32 0.05, %v353_v38  ;;  %v356_v52 = vsub.f32 %v216_v46, %v286_v47  ;;  %v287_v53 = vld [vmem:[%s1128_s29 + $0x60] sm:$0xff]  ;;  %v424_v55 = vmul.f32 0.05, %v354_v44 }
  0x5d   : > { %559 = vst [vmem:[%s1154_s19 + $0x20] sm:$0xff] %v489_v42  ;;  %560 = vst [vmem:[%s1154_s19 + $0x28] sm:$0xff] %v490_v43  ;;  %v425_v56 = vmul.f32 0.05, %v355_v45  ;;  %v357_v57 = vsub.f32 %v217_v48, %v287_v53  ;;  %v288_v58 = vld [vmem:[%s1128_s29 + $0x68] sm:$0xff]  ;;  %v219_v59 = vld [vmem:[%s1120_s17 + $0x70] sm:$0xff]  ;;  %v492_v60 = vadd.f32 %v422_v50, %v282_v27  ;;  %p874_p9 = por %p873_p7, %p872_p5 }
  0x5e   : > { %561 = vst [vmem:[%s1154_s19 + $0x30] sm:$0xff] %v491_v49  ;;  %v493_v61 = vadd.f32 %v423_v51, %v283_v33  ;;  %v426_v62 = vmul.f32 0.05, %v356_v52  ;;  %v358_v63 = vsub.f32 %v218_v54, %v288_v58  ;;  %v289_v0 = vld [vmem:[%s1128_s29 + $0x70] sm:$0xff]  ;;  %v220_v1 = vld [vmem:[%s1120_s17 + $0x78] sm:$0xff]  ;;  %v494_v3 = vadd.f32 %v424_v55, %v284_v39  ;;  %v221_v7 = vld [vmem:[%s1120_s17 + $0x80] sm:$0xff] }
  0x5f   : > { %v290_v2 = vld [vmem:[%s1128_s29 + $0x78] sm:$0xff]  ;;  %v495_v4 = vadd.f32 %v425_v56, %v285_v41  ;;  %v427_v5 = vmul.f32 0.05, %v357_v57  ;;  %v359_v6 = vsub.f32 %v219_v59, %v289_v0  ;;  %v291_v8 = vld [vmem:[%s1128_s29 + $0x80] sm:$0xff]  ;;  %v222_v9 = vld [vmem:[%s1120_s17 + $0x88] sm:$0xff]  ;;  %562 = vst [vmem:[%s1154_s19 + $0x38] sm:$0xff] %v492_v60  ;;  %p875_p11 = pnand %p874_p9, %p868_p10 }
  0x60   : > { %563 = vst [vmem:[%s1154_s19 + $0x40] sm:$0xff] %v493_v61  ;;  %v496_v10 = vadd.f32 %v426_v62, %v286_v47  ;;  %v428_v11 = vmul.f32 0.05, %v358_v63  ;;  %v360_v12 = vsub.f32 %v220_v1, %v290_v2  ;;  %v361_v13 = vsub.f32 %v221_v7, %v291_v8  ;;  %v292_v14 = vld [vmem:[%s1128_s29 + $0x88] sm:$0xff]  ;;  %v223_v15 = vld [vmem:[%s1120_s17 + $0x90] sm:$0xff]  ;;  %564 = vst [vmem:[%s1154_s19 + $0x48] sm:$0xff] %v494_v3 }
  0x61   : > { %v293_v16 = vld [vmem:[%s1128_s29 + $0x90] sm:$0xff]  ;;  %565 = vst [vmem:[%s1154_s19 + $0x50] sm:$0xff] %v495_v4  ;;  %v497_v17 = vadd.f32 %v427_v5, %v287_v53  ;;  %v429_v18 = vmul.f32 0.05, %v359_v6  ;;  %v362_v19 = vsub.f32 %v222_v9, %v292_v14  ;;  %v224_v21 = vld [vmem:[%s1120_s17 + $0x98] sm:$0xff]  ;;  %v225_v23 = vld [vmem:[%s1120_s17 + $0xa0] sm:$0xff] }
  0x62   : > { %v363_v20 = vsub.f32 %v223_v15, %v293_v16  ;;  %v294_v22 = vld [vmem:[%s1128_s29 + $0x98] sm:$0xff]  ;;  %566 = vst [vmem:[%s1154_s19 + $0x58] sm:$0xff] %v496_v10  ;;  %v498_v24 = vadd.f32 %v428_v11, %v288_v58  ;;  %v430_v25 = vmul.f32 0.05, %v360_v12  ;;  %v431_v26 = vmul.f32 0.05, %v361_v13 }
  0x63   : > { %v364_v27 = vsub.f32 %v224_v21, %v294_v22  ;;  %v295_v28 = vld [vmem:[%s1128_s29 + $0xa0] sm:$0xff]  ;;  %v226_v29 = vld [vmem:[%s1120_s17 + $0xa8] sm:$0xff]  ;;  %567 = vst [vmem:[%s1154_s19 + $0x60] sm:$0xff] %v497_v17  ;;  %v499_v30 = vadd.f32 %v429_v18, %v289_v0  ;;  %v432_v31 = vmul.f32 0.05, %v362_v19  ;;  %v227_v35 = vld [vmem:[%s1120_s17 + $0xb0] sm:$0xff] }
  0x64   : > { %v433_v32 = vmul.f32 0.05, %v363_v20  ;;  %v365_v33 = vsub.f32 %v225_v23, %v295_v28  ;;  %v296_v34 = vld [vmem:[%s1128_s29 + $0xa8] sm:$0xff]  ;;  %568 = vst [vmem:[%s1154_s19 + $0x68] sm:$0xff] %v498_v24  ;;  %v500_v36 = vadd.f32 %v430_v25, %v290_v2  ;;  %v501_v37 = vadd.f32 %v431_v26, %v291_v8  ;;  %v297_v40 = vld [vmem:[%s1128_s29 + $0xb0] sm:$0xff]  ;;  %v228_v41 = vld [vmem:[%s1120_s17 + $0xb8] sm:$0xff] }
  0x65   : > { %v434_v38 = vmul.f32 0.05, %v364_v27  ;;  %v366_v39 = vsub.f32 %v226_v29, %v296_v34  ;;  %v298_v42 = vld [vmem:[%s1128_s29 + $0xb8] sm:$0xff]  ;;  %569 = vst [vmem:[%s1154_s19 + $0x70] sm:$0xff] %v499_v30  ;;  %v502_v43 = vadd.f32 %v432_v31, %v292_v14  ;;  %v367_v46 = vsub.f32 %v227_v35, %v297_v40  ;;  %v229_v47 = vld [vmem:[%s1120_s17 + $0xc0] sm:$0xff]  ;;  %v230_v49 = vld [vmem:[%s1120_s17 + $0xc8] sm:$0xff] }
  0x66   : > { %v503_v44 = vadd.f32 %v433_v32, %v293_v16  ;;  %v435_v45 = vmul.f32 0.05, %v365_v33  ;;  %v299_v48 = vld [vmem:[%s1128_s29 + $0xc0] sm:$0xff]  ;;  %570 = vst [vmem:[%s1154_s19 + $0x78] sm:$0xff] %v500_v36  ;;  %571 = vst [vmem:[%s1154_s19 + $0x80] sm:$0xff] %v501_v37  ;;  %v368_v52 = vsub.f32 %v228_v41, %v298_v42  ;;  %v300_v54 = vld [vmem:[%s1128_s29 + $0xc8] sm:$0xff] }
  0x67   : > { %v504_v50 = vadd.f32 %v434_v38, %v294_v22  ;;  %v436_v51 = vmul.f32 0.05, %v366_v39  ;;  %v369_v53 = vsub.f32 %v229_v47, %v299_v48  ;;  %v231_v55 = vld [vmem:[%s1120_s17 + $0xd0] sm:$0xff]  ;;  %572 = vst [vmem:[%s1154_s19 + $0x88] sm:$0xff] %v502_v43  ;;  %v437_v58 = vmul.f32 0.05, %v367_v46 }
  0x68   : > { %v301_v56 = vld [vmem:[%s1128_s29 + $0xd0] sm:$0xff]  ;;  %573 = vst [vmem:[%s1154_s19 + $0x90] sm:$0xff] %v503_v44  ;;  %v505_v57 = vadd.f32 %v435_v45, %v295_v28  ;;  %v370_v59 = vsub.f32 %v230_v49, %v300_v54  ;;  %v232_v61 = vld [vmem:[%s1120_s17 + $0xd8] sm:$0xff]  ;;  %v233_v63 = vld [vmem:[%s1120_s17 + $0xe0] sm:$0xff]  ;;  %v438_v1 = vmul.f32 0.05, %v368_v52 }
  0x69   : > { %v371_v60 = vsub.f32 %v231_v55, %v301_v56  ;;  %v302_v62 = vld [vmem:[%s1128_s29 + $0xd8] sm:$0xff]  ;;  %574 = vst [vmem:[%s1154_s19 + $0x98] sm:$0xff] %v504_v50  ;;  %v506_v0 = vadd.f32 %v436_v51, %v296_v34  ;;  %v439_v2 = vmul.f32 0.05, %v369_v53  ;;  %v303_v4 = vld [vmem:[%s1128_s29 + $0xe0] sm:$0xff]  ;;  %v234_v5 = vld [vmem:[%s1120_s17 + $0xe8] sm:$0xff]  ;;  %v507_v6 = vadd.f32 %v437_v58, %v297_v40 }
  0x6a   : > { %v372_v3 = vsub.f32 %v232_v61, %v302_v62  ;;  %575 = vst [vmem:[%s1154_s19 + $0xa0] sm:$0xff] %v505_v57  ;;  %v440_v7 = vmul.f32 0.05, %v370_v59  ;;  %v373_v9 = vsub.f32 %v233_v63, %v303_v4  ;;  %v304_v10 = vld [vmem:[%s1128_s29 + $0xe8] sm:$0xff]  ;;  %v235_v11 = vld [vmem:[%s1120_s17 + $0xf0] sm:$0xff]  ;;  %v508_v12 = vadd.f32 %v438_v1, %v298_v42  ;;  %v236_v17 = vld [vmem:[%s1120_s17 + $0xf8] sm:$0xff] }
  0x6b   : > { %v441_v8 = vmul.f32 0.05, %v371_v60  ;;  %576 = vst [vmem:[%s1154_s19 + $0xa8] sm:$0xff] %v506_v0  ;;  %v509_v13 = vadd.f32 %v439_v2, %v299_v48  ;;  %v374_v15 = vsub.f32 %v234_v5, %v304_v10  ;;  %v305_v16 = vld [vmem:[%s1128_s29 + $0xf0] sm:$0xff]  ;;  %v306_v18 = vld [vmem:[%s1128_s29 + $0xf8] sm:$0xff]  ;;  %577 = vst [vmem:[%s1154_s19 + $0xb0] sm:$0xff] %v507_v6 }
  0x6c   : > { %v442_v14 = vmul.f32 0.05, %v372_v3  ;;  %v510_v19 = vadd.f32 %v440_v7, %v300_v54  ;;  %v443_v21 = vmul.f32 0.05, %v373_v9  ;;  %v375_v22 = vsub.f32 %v235_v11, %v305_v16  ;;  %v237_v23 = vld [vmem:[%s1120_s17 + $0x100] sm:$0xff]  ;;  %v238_v25 = vld [vmem:[%s1120_s17 + $0x108] sm:$0xff] }
  0x6d   : > { %v511_v20 = vadd.f32 %v441_v8, %v301_v56  ;;  %v307_v24 = vld [vmem:[%s1128_s29 + $0x100] sm:$0xff]  ;;  %578 = vst [vmem:[%s1154_s19 + $0xb8] sm:$0xff] %v508_v12  ;;  %579 = vst [vmem:[%s1154_s19 + $0xc0] sm:$0xff] %v509_v13  ;;  %v444_v27 = vmul.f32 0.05, %v374_v15  ;;  %v376_v28 = vsub.f32 %v236_v17, %v306_v18  ;;  %v308_v30 = vld [vmem:[%s1128_s29 + $0x108] sm:$0xff] }
  0x6e   : > { %v512_v26 = vadd.f32 %v442_v14, %v302_v62  ;;  %v377_v29 = vsub.f32 %v237_v23, %v307_v24  ;;  %v239_v31 = vld [vmem:[%s1120_s17 + $0x110] sm:$0xff]  ;;  %580 = vst [vmem:[%s1154_s19 + $0xc8] sm:$0xff] %v510_v19  ;;  %v513_v33 = vadd.f32 %v443_v21, %v303_v4  ;;  %v445_v34 = vmul.f32 0.05, %v375_v22  ;;  %v240_v37 = vld [vmem:[%s1120_s17 + $0x118] sm:$0xff]  ;;  %v241_v39 = vld [vmem:[%s1120_s17 + $0x120] sm:$0xff] }
  0x6f   : > { %v309_v32 = vld [vmem:[%s1128_s29 + $0x110] sm:$0xff]  ;;  %581 = vst [vmem:[%s1154_s19 + $0xd0] sm:$0xff] %v511_v20  ;;  %v378_v35 = vsub.f32 %v238_v25, %v308_v30  ;;  %v310_v38 = vld [vmem:[%s1128_s29 + $0x118] sm:$0xff]  ;;  %v514_v40 = vadd.f32 %v444_v27, %v304_v10  ;;  %v446_v41 = vmul.f32 0.05, %v376_v28  ;;  %v311_v44 = vld [vmem:[%s1128_s29 + $0x120] sm:$0xff] }
  0x70   : > { %v379_v36 = vsub.f32 %v239_v31, %v309_v32  ;;  %582 = vst [vmem:[%s1154_s19 + $0xd8] sm:$0xff] %v512_v26  ;;  %v447_v42 = vmul.f32 0.05, %v377_v29  ;;  %v380_v43 = vsub.f32 %v240_v37, %v310_v38  ;;  %v242_v45 = vld [vmem:[%s1120_s17 + $0x128] sm:$0xff]  ;;  %583 = vst [vmem:[%s1154_s19 + $0xe0] sm:$0xff] %v513_v33  ;;  %v515_v46 = vadd.f32 %v445_v34, %v305_v16  ;;  %v243_v51 = vld [vmem:[%s1120_s17 + $0x130] sm:$0xff] }
  0x71   : > { %v448_v47 = vmul.f32 0.05, %v378_v35  ;;  %v381_v49 = vsub.f32 %v241_v39, %v311_v44  ;;  %v312_v50 = vld [vmem:[%s1128_s29 + $0x128] sm:$0xff]  ;;  %584 = vst [vmem:[%s1154_s19 + $0xe8] sm:$0xff] %v514_v40  ;;  %v516_v52 = vadd.f32 %v446_v41, %v306_v18  ;;  %v313_v56 = vld [vmem:[%s1128_s29 + $0x130] sm:$0xff]  ;;  %v244_v57 = vld [vmem:[%s1120_s17 + $0x138] sm:$0xff] }
  0x72   : > { %v449_v48 = vmul.f32 0.05, %v379_v36  ;;  %v517_v53 = vadd.f32 %v447_v42, %v307_v24  ;;  %v450_v54 = vmul.f32 0.05, %v380_v43  ;;  %v382_v55 = vsub.f32 %v242_v45, %v312_v50  ;;  %v314_v58 = vld [vmem:[%s1128_s29 + $0x138] sm:$0xff]  ;;  %585 = vst [vmem:[%s1154_s19 + $0xf0] sm:$0xff] %v515_v46 }
  0x73   : > { %v518_v59 = vadd.f32 %v448_v47, %v308_v30  ;;  %v451_v61 = vmul.f32 0.05, %v381_v49  ;;  %v383_v62 = vsub.f32 %v243_v51, %v313_v56  ;;  %v245_v63 = vld [vmem:[%s1120_s17 + $0x140] sm:$0xff]  ;;  %v246_v1 = vld [vmem:[%s1120_s17 + $0x148] sm:$0xff]  ;;  %586 = vst [vmem:[%s1154_s19 + $0xf8] sm:$0xff] %v516_v52  ;;  %v384_v4 = vsub.f32 %v244_v57, %v314_v58  ;;  %v247_v7 = vld [vmem:[%s1120_s17 + $0x150] sm:$0xff] }
  0x74   : > { %v519_v60 = vadd.f32 %v449_v48, %v309_v32  ;;  %v315_v0 = vld [vmem:[%s1128_s29 + $0x140] sm:$0xff]  ;;  %587 = vst [vmem:[%s1154_s19 + $0x100] sm:$0xff] %v517_v53  ;;  %v520_v2 = vadd.f32 %v450_v54, %v310_v38  ;;  %v452_v3 = vmul.f32 0.05, %v382_v55  ;;  %v316_v6 = vld [vmem:[%s1128_s29 + $0x148] sm:$0xff]  ;;  %v317_v8 = vld [vmem:[%s1128_s29 + $0x150] sm:$0xff] }
  0x75   : > { %v385_v5 = vsub.f32 %v245_v63, %v315_v0  ;;  %588 = vst [vmem:[%s1154_s19 + $0x108] sm:$0xff] %v518_v59  ;;  %v521_v9 = vadd.f32 %v451_v61, %v311_v44  ;;  %v453_v10 = vmul.f32 0.05, %v383_v62  ;;  %v386_v11 = vsub.f32 %v246_v1, %v316_v6  ;;  %v248_v13 = vld [vmem:[%s1120_s17 + $0x158] sm:$0xff]  ;;  %v249_v15 = vld [vmem:[%s1120_s17 + $0x160] sm:$0xff]  ;;  %v250_v21 = vld [vmem:[%s1120_s17 + $0x168] sm:$0xff] }
  0x76   : > { %589 = vst [vmem:[%s1154_s19 + $0x110] sm:$0xff] %v519_v60  ;;  %v387_v12 = vsub.f32 %v247_v7, %v317_v8  ;;  %v318_v14 = vld [vmem:[%s1128_s29 + $0x158] sm:$0xff]  ;;  %590 = vst [vmem:[%s1154_s19 + $0x118] sm:$0xff] %v520_v2  ;;  %v522_v16 = vadd.f32 %v452_v3, %v312_v50  ;;  %v454_v17 = vmul.f32 0.05, %v384_v4  ;;  %v319_v20 = vld [vmem:[%s1128_s29 + $0x160] sm:$0xff] }
  0x77   : > { %v455_v18 = vmul.f32 0.05, %v385_v5  ;;  %v388_v19 = vsub.f32 %v248_v13, %v318_v14  ;;  %591 = vst [vmem:[%s1154_s19 + $0x120] sm:$0xff] %v521_v9  ;;  %v523_v22 = vadd.f32 %v453_v10, %v313_v56  ;;  %v456_v23 = vmul.f32 0.05, %v386_v11  ;;  %v320_v26 = vld [vmem:[%s1128_s29 + $0x168] sm:$0xff] }
  0x78   : > { %v457_v24 = vmul.f32 0.05, %v387_v12  ;;  %v389_v25 = vsub.f32 %v249_v15, %v319_v20  ;;  %v251_v27 = vld [vmem:[%s1120_s17 + $0x170] sm:$0xff]  ;;  %592 = vst [vmem:[%s1154_s19 + $0x128] sm:$0xff] %v522_v16  ;;  %v524_v28 = vadd.f32 %v454_v17, %v314_v58  ;;  %v390_v31 = vsub.f32 %v250_v21, %v320_v26  ;;  %v252_v33 = vld [vmem:[%s1120_s17 + $0x178] sm:$0xff]  ;;  %v253_v39 = vld [vmem:[%s1120_s17 + $0x180] sm:$0xff] }
  0x79   : > { %v525_v29 = vadd.f32 %v455_v18, %v315_v0  ;;  %v458_v30 = vmul.f32 0.05, %v388_v19  ;;  %v321_v32 = vld [vmem:[%s1128_s29 + $0x170] sm:$0xff]  ;;  %v322_v34 = vld [vmem:[%s1128_s29 + $0x178] sm:$0xff]  ;;  %593 = vst [vmem:[%s1154_s19 + $0x130] sm:$0xff] %v523_v22  ;;  %v526_v35 = vadd.f32 %v456_v23, %v316_v6  ;;  %v323_v40 = vld [vmem:[%s1128_s29 + $0x180] sm:$0xff] }
  0x7a   : > { %v527_v36 = vadd.f32 %v457_v24, %v317_v8  ;;  %v459_v37 = vmul.f32 0.05, %v389_v25  ;;  %v391_v38 = vsub.f32 %v251_v27, %v321_v32  ;;  %v254_v41 = vld [vmem:[%s1120_s17 + $0x188] sm:$0xff]  ;;  %594 = vst [vmem:[%s1154_s19 + $0x138] sm:$0xff] %v524_v28  ;;  %v460_v43 = vmul.f32 0.05, %v390_v31 }
  0x7b   : > { %595 = vst [vmem:[%s1154_s19 + $0x140] sm:$0xff] %v525_v29  ;;  %v528_v42 = vadd.f32 %v458_v30, %v318_v14  ;;  %v392_v44 = vsub.f32 %v252_v33, %v322_v34  ;;  %v393_v45 = vsub.f32 %v253_v39, %v323_v40  ;;  %v324_v46 = vld [vmem:[%s1128_s29 + $0x188] sm:$0xff]  ;;  %v255_v47 = vld [vmem:[%s1120_s17 + $0x190] sm:$0xff]  ;;  %596 = vst [vmem:[%s1154_s19 + $0x148] sm:$0xff] %v526_v35 }
  0x7c   : > { %v325_v48 = vld [vmem:[%s1128_s29 + $0x190] sm:$0xff]  ;;  %597 = vst [vmem:[%s1154_s19 + $0x150] sm:$0xff] %v527_v36  ;;  %v529_v49 = vadd.f32 %v459_v37, %v319_v20  ;;  %v461_v50 = vmul.f32 0.05, %v391_v38  ;;  %v394_v51 = vsub.f32 %v254_v41, %v324_v46  ;;  %v256_v53 = vld [vmem:[%s1120_s17 + $0x198] sm:$0xff]  ;;  %v257_v55 = vld [vmem:[%s1120_s17 + $0x1a0] sm:$0xff]  ;;  %v530_v56 = vadd.f32 %v460_v43, %v320_v26 }
  0x7d   : > { %v395_v52 = vsub.f32 %v255_v47, %v325_v48  ;;  %v326_v54 = vld [vmem:[%s1128_s29 + $0x198] sm:$0xff]  ;;  %598 = vst [vmem:[%s1154_s19 + $0x158] sm:$0xff] %v528_v42  ;;  %v462_v57 = vmul.f32 0.05, %v392_v44  ;;  %v463_v58 = vmul.f32 0.05, %v393_v45 }
  0x7e   : > { %v396_v59 = vsub.f32 %v256_v53, %v326_v54  ;;  %v327_v60 = vld [vmem:[%s1128_s29 + $0x1a0] sm:$0xff]  ;;  %v258_v61 = vld [vmem:[%s1120_s17 + $0x1a8] sm:$0xff]  ;;  %599 = vst [vmem:[%s1154_s19 + $0x160] sm:$0xff] %v529_v49  ;;  %v531_v62 = vadd.f32 %v461_v50, %v321_v32  ;;  %v464_v63 = vmul.f32 0.05, %v394_v51  ;;  %v259_v3 = vld [vmem:[%s1120_s17 + $0x1b0] sm:$0xff] }
  0x7f   : > { %v465_v0 = vmul.f32 0.05, %v395_v52  ;;  %v397_v1 = vsub.f32 %v257_v55, %v327_v60  ;;  %v328_v2 = vld [vmem:[%s1128_s29 + $0x1a8] sm:$0xff]  ;;  %600 = vst [vmem:[%s1154_s19 + $0x168] sm:$0xff] %v530_v56  ;;  %v532_v4 = vadd.f32 %v462_v57, %v322_v34  ;;  %v533_v5 = vadd.f32 %v463_v58, %v323_v40  ;;  %v329_v8 = vld [vmem:[%s1128_s29 + $0x1b0] sm:$0xff]  ;;  %v260_v9 = vld [vmem:[%s1120_s17 + $0x1b8] sm:$0xff] }
  0x80   : > { %v466_v6 = vmul.f32 0.05, %v396_v59  ;;  %v398_v7 = vsub.f32 %v258_v61, %v328_v2  ;;  %v330_v10 = vld [vmem:[%s1128_s29 + $0x1b8] sm:$0xff]  ;;  %601 = vst [vmem:[%s1154_s19 + $0x170] sm:$0xff] %v531_v62  ;;  %v534_v11 = vadd.f32 %v464_v63, %v324_v46  ;;  %v399_v14 = vsub.f32 %v259_v3, %v329_v8  ;;  %v261_v15 = vld [vmem:[%s1120_s17 + $0x1c0] sm:$0xff]  ;;  %v262_v17 = vld [vmem:[%s1120_s17 + $0x1c8] sm:$0xff] }
  0x81   : > { %v535_v12 = vadd.f32 %v465_v0, %v325_v48  ;;  %v467_v13 = vmul.f32 0.05, %v397_v1  ;;  %v331_v16 = vld [vmem:[%s1128_s29 + $0x1c0] sm:$0xff]  ;;  %602 = vst [vmem:[%s1154_s19 + $0x178] sm:$0xff] %v532_v4  ;;  %603 = vst [vmem:[%s1154_s19 + $0x180] sm:$0xff] %v533_v5  ;;  %v400_v20 = vsub.f32 %v260_v9, %v330_v10  ;;  %v332_v22 = vld [vmem:[%s1128_s29 + $0x1c8] sm:$0xff] }
  0x82   : > { %v536_v18 = vadd.f32 %v466_v6, %v326_v54  ;;  %v468_v19 = vmul.f32 0.05, %v398_v7  ;;  %v401_v21 = vsub.f32 %v261_v15, %v331_v16  ;;  %v263_v23 = vld [vmem:[%s1120_s17 + $0x1d0] sm:$0xff]  ;;  %604 = vst [vmem:[%s1154_s19 + $0x188] sm:$0xff] %v534_v11  ;;  %v469_v26 = vmul.f32 0.05, %v399_v14 }
  0x83   : > { %v333_v24 = vld [vmem:[%s1128_s29 + $0x1d0] sm:$0xff]  ;;  %605 = vst [vmem:[%s1154_s19 + $0x190] sm:$0xff] %v535_v12  ;;  %v537_v25 = vadd.f32 %v467_v13, %v327_v60  ;;  %v402_v27 = vsub.f32 %v262_v17, %v332_v22  ;;  %v264_v29 = vld [vmem:[%s1120_s17 + $0x1d8] sm:$0xff]  ;;  %v265_v31 = vld [vmem:[%s1120_s17 + $0x1e0] sm:$0xff]  ;;  %v470_v33 = vmul.f32 0.05, %v400_v20 }
  0x84   : > { %v403_v28 = vsub.f32 %v263_v23, %v333_v24  ;;  %v334_v30 = vld [vmem:[%s1128_s29 + $0x1d8] sm:$0xff]  ;;  %606 = vst [vmem:[%s1154_s19 + $0x198] sm:$0xff] %v536_v18  ;;  %v538_v32 = vadd.f32 %v468_v19, %v328_v2  ;;  %v471_v34 = vmul.f32 0.05, %v401_v21  ;;  %v335_v36 = vld [vmem:[%s1128_s29 + $0x1e0] sm:$0xff]  ;;  %v266_v37 = vld [vmem:[%s1120_s17 + $0x1e8] sm:$0xff]  ;;  %v539_v38 = vadd.f32 %v469_v26, %v329_v8 }
  0x85   : > { %v404_v35 = vsub.f32 %v264_v29, %v334_v30  ;;  %607 = vst [vmem:[%s1154_s19 + $0x1a0] sm:$0xff] %v537_v25  ;;  %v472_v39 = vmul.f32 0.05, %v402_v27  ;;  %v405_v41 = vsub.f32 %v265_v31, %v335_v36  ;;  %v336_v42 = vld [vmem:[%s1128_s29 + $0x1e8] sm:$0xff]  ;;  %v267_v43 = vld [vmem:[%s1120_s17 + $0x1f0] sm:$0xff]  ;;  %v540_v44 = vadd.f32 %v470_v33, %v330_v10  ;;  %v268_v49 = vld [vmem:[%s1120_s17 + $0x1f8] sm:$0xff] }
  0x86   : > { %v473_v40 = vmul.f32 0.05, %v403_v28  ;;  %608 = vst [vmem:[%s1154_s19 + $0x1a8] sm:$0xff] %v538_v32  ;;  %v541_v45 = vadd.f32 %v471_v34, %v331_v16  ;;  %v406_v47 = vsub.f32 %v266_v37, %v336_v42  ;;  %v337_v48 = vld [vmem:[%s1128_s29 + $0x1f0] sm:$0xff]  ;;  %v338_v50 = vld [vmem:[%s1128_s29 + $0x1f8] sm:$0xff]  ;;  %609 = vst [vmem:[%s1154_s19 + $0x1b0] sm:$0xff] %v539_v38 }
  0x87   : > { %v474_v46 = vmul.f32 0.05, %v404_v35  ;;  %v542_v51 = vadd.f32 %v472_v39, %v332_v22  ;;  %v475_v53 = vmul.f32 0.05, %v405_v41  ;;  %v407_v54 = vsub.f32 %v267_v43, %v337_v48  ;;  %v269_v55 = vld [vmem:[%s1120_s17 + $0x200] sm:$0xff]  ;;  %v270_v57 = vld [vmem:[%s1120_s17 + $0x208] sm:$0xff] }
  0x88   : > { %v543_v52 = vadd.f32 %v473_v40, %v333_v24  ;;  %v339_v56 = vld [vmem:[%s1128_s29 + $0x200] sm:$0xff]  ;;  %610 = vst [vmem:[%s1154_s19 + $0x1b8] sm:$0xff] %v540_v44  ;;  %611 = vst [vmem:[%s1154_s19 + $0x1c0] sm:$0xff] %v541_v45  ;;  %v476_v59 = vmul.f32 0.05, %v406_v47  ;;  %v408_v60 = vsub.f32 %v268_v49, %v338_v50  ;;  %v340_v62 = vld [vmem:[%s1128_s29 + $0x208] sm:$0xff] }
  0x89   : > { %v544_v58 = vadd.f32 %v474_v46, %v334_v30  ;;  %v409_v61 = vsub.f32 %v269_v55, %v339_v56  ;;  %v271_v63 = vld [vmem:[%s1120_s17 + $0x210] sm:$0xff]  ;;  %612 = vst [vmem:[%s1154_s19 + $0x1c8] sm:$0xff] %v542_v51  ;;  %v545_v1 = vadd.f32 %v475_v53, %v335_v36  ;;  %v477_v2 = vmul.f32 0.05, %v407_v54  ;;  %v272_v5 = vld [vmem:[%s1120_s17 + $0x218] sm:$0xff]  ;;  %v273_v7 = vld [vmem:[%s1120_s17 + $0x220] sm:$0xff] }
  0x8a   : > { %v341_v0 = vld [vmem:[%s1128_s29 + $0x210] sm:$0xff]  ;;  %613 = vst [vmem:[%s1154_s19 + $0x1d0] sm:$0xff] %v543_v52  ;;  %v410_v3 = vsub.f32 %v270_v57, %v340_v62  ;;  %v342_v6 = vld [vmem:[%s1128_s29 + $0x218] sm:$0xff]  ;;  %v546_v8 = vadd.f32 %v476_v59, %v336_v42  ;;  %v478_v9 = vmul.f32 0.05, %v408_v60  ;;  %v343_v12 = vld [vmem:[%s1128_s29 + $0x220] sm:$0xff] }
  0x8b   : > { %v411_v4 = vsub.f32 %v271_v63, %v341_v0  ;;  %614 = vst [vmem:[%s1154_s19 + $0x1d8] sm:$0xff] %v544_v58  ;;  %v479_v10 = vmul.f32 0.05, %v409_v61  ;;  %v412_v11 = vsub.f32 %v272_v5, %v342_v6  ;;  %v274_v13 = vld [vmem:[%s1120_s17 + $0x228] sm:$0xff]  ;;  %615 = vst [vmem:[%s1154_s19 + $0x1e0] sm:$0xff] %v545_v1  ;;  %v547_v14 = vadd.f32 %v477_v2, %v337_v48 }
  0x8c   : > { %v480_v15 = vmul.f32 0.05, %v410_v3  ;;  %v413_v17 = vsub.f32 %v273_v7, %v343_v12  ;;  %v344_v18 = vld [vmem:[%s1128_s29 + $0x228] sm:$0xff]  ;;  %616 = vst [vmem:[%s1154_s19 + $0x1e8] sm:$0xff] %v546_v8  ;;  %v548_v19 = vadd.f32 %v478_v9, %v338_v50 }
  0x8d   : > { %v481_v16 = vmul.f32 0.05, %v411_v4  ;;  %v549_v20 = vadd.f32 %v479_v10, %v339_v56  ;;  %v482_v21 = vmul.f32 0.05, %v412_v11  ;;  %v414_v22 = vsub.f32 %v274_v13, %v344_v18  ;;  %617 = vst [vmem:[%s1154_s19 + $0x1f0] sm:$0xff] %v547_v14 }
  0x8e   : > { %v550_v23 = vadd.f32 %v480_v15, %v340_v62  ;;  %v483_v25 = vmul.f32 0.05, %v413_v17  ;;  %618 = vst [vmem:[%s1154_s19 + $0x1f8] sm:$0xff] %v548_v19 }
  0x8f   : > { %v551_v24 = vadd.f32 %v481_v16, %v341_v0  ;;  %619 = vst [vmem:[%s1154_s19 + $0x200] sm:$0xff] %v549_v20  ;;  %v552_v26 = vadd.f32 %v482_v21, %v342_v6  ;;  %v484_v27 = vmul.f32 0.05, %v414_v22 }
  0x90   : > { %620 = vst [vmem:[%s1154_s19 + $0x208] sm:$0xff] %v550_v23  ;;  %v553_v28 = vadd.f32 %v483_v25, %v343_v12 }
  0x91   : > { %621 = vst [vmem:[%s1154_s19 + $0x210] sm:$0xff] %v551_v24  ;;  %622 = vst [vmem:[%s1154_s19 + $0x218] sm:$0xff] %v552_v26  ;;  %v554_v29 = vadd.f32 %v484_v27, %v344_v18 }
  0x92   : > { %623 = vst [vmem:[%s1154_s19 + $0x220] sm:$0xff] %v553_v28 }
  0x93   : > { %624 = vst [vmem:[%s1154_s19 + $0x228] sm:$0xff] %v554_v29 }
  0x94   : > { %878 = shalt.err (!%p875_p11)
}
  0x95   : > { %s879_s6 = scalar_lea.hbm %s1352_s16, 8960  ;;  %s883_s3 = scalar_lea.hbm %s1400_s2, 17920 }
  0x96   : > { %p880_p3 = scmp.ne.s32.totalorder %s1352_s16, %s879_s6  ;;  %p884_p2 = scmp.lt.u32.totalorder %s1352_s16, %s1400_s2 }
  0x97   : > { %p885_p4 = scmp.lt.u32.totalorder %s883_s3, %s879_s6  ;;  %p887_p13 = scmp.lt.u32.totalorder %s879_s6, %s1352_s16 }
  0x98   : > { %p881_p8 = pnand %p880_p3, %p1409_p1 }
  0x99   : > { %p886_p6 = por %p885_p4, %p884_p2 }
  0x9a   : > { %p882_p0 = pneg %p881_p8 }
  0x9b   : > { %p888_p12 = por %p887_p13, %p886_p6 }
  0x9d   : > { %p889_p10 = pnand %p888_p12, %p882_p0 }
  0x9f   : > { %892 = shalt.err (!%p889_p10)
}
  0xa0   : > { %s942_s22 = smov 128   ;;  %s943_s29 = smov 8  }
  0xa1   : > { %754 = dma.vmem_to_hbm [thread:$0]  (%p1409_p1), %s1346_s5, 8960, %s1352_s16, %s626_s27, %s942_s22, %s942_s22, %s943_s29  }
  0xa2 PF: > { %s654_s19 = sand.u32 1, %s923_s9   ;;  %p1410_p5 = scmp.ne.s32.totalorder %s1405_s21, 0 }
  0xa3   : > { %p1411_p7 = scmp.ge.s32.totalorder %s935_s12, 2  ;;  %s655_s4 = scalar_lea.sflag [#allocation4], %s654_s19 }
  0xa5   : > { %p764_p9 = pnand %p1411_p7, %p1410_p5 }
  0xa7   : > { %918 = dma.done.wait (!%p764_p9), %s655_s4, 8960  }
  0xa8   : > { %920 = vsyncadd (!%p764_p9), %s655_s4, 4294958336  ;;  %p18_p11 = scmp.ge.s32.totalorder %s984_s15, 4   ;;  %s1412_s9 = smov %s927_s10 }
  0xa9   : > { %s1413_s10 = smov %s931_s11  ;;  %s1414_s11 = smov %s996_s18 }
  0xaa   : > { %s1415_s12 = smov %s984_s15  ;;  %20 = sbr.rel (!%p18_p11) target bundleno = 7 (0x7), region = 86 }
  0xb1   :  { %660 = vsyncpa [#allocation3], 1 }
  0xb2   :  { %662 = vsyncpa [#allocation3 + $0x1], 1 }
  0xb3   :  { %663 = vsyncpa [#allocation6], 1 }
  0xb4   :  { %665 = vsyncpa [#allocation6 + $0x1], 1 }
  0xb5   :  { %666 = vsyncpa [#allocation4], 1 }
  0xb6   :  { %668 = vsyncpa [#allocation4 + $0x1], 1 }

</bundles_post_ra>
